<compile_context>
chip_gen: v7x
topology: tpu7x:2x2x1
jax: 0.10.0
libtpu: 0.0.40
codegen_flags: <defaults>
</compile_context>

<pallas_src>
import functools

import jax
import jax.numpy as jnp
import numpy as np
from jax.experimental import pallas as pl
from jax.experimental.pallas import tpu as pltpu


def _gather_copy_kernel(lines_ref, x_ref, o_ref):
    # The data-dependent gather happens in the input BlockSpec index_map
    # (scalar-prefetch driven); the body is a single dense whole-block copy.
    del lines_ref
    o_ref[...] = x_ref[...]


@functools.partial(jax.jit, static_argnames=("rows", "groups", "remain_t"))
def _forward(patches, keys, *, rows, groups, remain_t):
    T, B, C = patches.shape

    # ---- per-batch shuffle indexes, closed form (vmapped over batch keys) ----
    def per_batch(key):
        lines = jax.random.permutation(key, 16).astype(jnp.int32)   # column permutation
        inv = jnp.argsort(lines).astype(jnp.int32)                   # inverse permutation
        r = jnp.arange(rows, dtype=jnp.int32)
        # fwd[i*rows + r] = r*16 + lines[i]
        fwd = (lines[:, None] + 16 * r[None, :]).reshape(-1)
        # bwd = argsort(fwd):  bwd[r*16 + c] = inv[c]*rows + r
        bwd = (inv[None, :] * rows + r[:, None]).reshape(-1)
        return lines, fwd, bwd

    lines_b, fwd_b, bwd_b = jax.vmap(per_batch)(keys)    # (B,16), (B,T), (B,T)
    forward_indexes = fwd_b.T                             # (T, B) int32
    backward_indexes = bwd_b.T                            # (T, B) int32

    # ---- layout: (T, B, C) -> (B, 16, rows, C): per-(batch, column) blocks are
    #      (rows, C) slabs whose last two dims equal the full array dims
    #      (dense, unmasked (8,128)-aligned DMA tiles).
    x = patches.reshape(rows, 16, B, C).transpose(2, 1, 0, 3)

    out = pl.pallas_call(
        _gather_copy_kernel,
        out_shape=jax.ShapeDtypeStruct((B, groups, rows, C), patches.dtype),
        grid_spec=pltpu.PrefetchScalarGridSpec(
            num_scalar_prefetch=1,          # lines_b lands in SMEM, visible to index_maps
            grid=(B, groups),
            in_specs=[
                pl.BlockSpec((None, None, rows, C),
                             lambda b, i, lines: (b, lines[b, i], 0, 0)),
            ],
            out_specs=pl.BlockSpec((None, None, rows, C),
                                   lambda b, i, lines: (b, i, 0, 0)),
        ),
        compiler_params=pltpu.CompilerParams(
            dimension_semantics=("parallel", "parallel"),
        ),
    )(lines_b, x)

    # (B, groups, rows, C) -> (groups*rows, B, C) -> keep first remain_t rows.
    out = out.reshape(B, groups * rows, C).transpose(1, 0, 2)[:remain_t]
    return out, forward_indexes, backward_indexes


def patch_shuffle_horizontal(patches, key, ratio: float = 0.5):
    """Forward pass of PatchShuffleHorizontal.

    patches: (T, B, C), T a multiple of 16 (the module implies T == 320).
    Returns (patches_out (remain_T, B, C), forward_indexes (T, B), backward_indexes (T, B)).
    """
    T, B, C = patches.shape
    assert T % 16 == 0, "T must be a multiple of 16 (module hardcodes reshape(T//16, 16))"
    rows = T // 16
    remain_t = int(T * (1 - ratio)) - 1            # same formula as the PyTorch module
    groups = -(-remain_t // rows)                  # ceil: column groups actually needed
    keys = jax.random.split(key, B)
    return _forward(patches, keys, rows=rows, groups=groups, remain_t=remain_t)


if __name__ == "__main__":
    key = jax.random.PRNGKey(0)
    k_data, k_shuffle = jax.random.split(key)

    # T = 320 is forced by horizontal_indexes' reshape(20, 16); B, C kept small.
    T, B, C = 320, 2, 128
    patches = jax.random.normal(k_data, (T, B, C), dtype=jnp.float32)

    out, fwd_idx, bwd_idx = patch_shuffle_horizontal(patches, k_shuffle, ratio=0.5)
    out = jax.block_until_ready(out)

    # Pure-JAX reference of take_indexes + truncation.
    remain_T = int(T * (1 - 0.5)) - 1
    ref = jnp.take_along_axis(
        patches, jnp.broadcast_to(fwd_idx[:, :, None], (T, B, C)), axis=0
    )[:remain_T]

    assert out.shape == (remain_T, B, C), out.shape
    assert fwd_idx.shape == (T, B) and bwd_idx.shape == (T, B)
    np.testing.assert_allclose(np.asarray(out), np.asarray(ref), rtol=0, atol=0)
    # forward indexes are a valid per-batch permutation and backward indexes invert them.
    np.testing.assert_array_equal(
        np.sort(np.asarray(fwd_idx), axis=0), np.arange(T)[:, None].repeat(B, axis=1)
    )
    np.testing.assert_array_equal(
        np.take_along_axis(np.asarray(fwd_idx), np.asarray(bwd_idx), axis=0),
        np.arange(T)[:, None].repeat(B, axis=1),
    )

    print("KERNEL_OK")
</pallas_src>

<mosaic_0001>
module attributes {stable_mosaic.version = 11 : i64} {
  func.func @_gather_copy_kernel(%arg0: i32, %arg1: i32, %arg2: memref<2x16xi32, #tpu.memory_space<smem>>, %arg3: memref<1x1x20x128xf32, #tpu.memory_space<vmem>>, %arg4: memref<1x1x20x128xf32, #tpu.memory_space<vmem>>) attributes {dimension_semantics = [#tpu.dimension_semantics<parallel>, #tpu.dimension_semantics<parallel>], iteration_bounds = array<i64: 2, 8>, scalar_prefetch = 1 : i64, scratch_operands = 0 : i64, tpu.core_type = #tpu.core_type<tc>, window_params = [{transform_indices = @transform_0, window_bounds = array<i64: 1, 1, 20, 128>}, {transform_indices = @transform_1, window_bounds = array<i64: 1, 1, 20, 128>}]} {
    %c0 = arith.constant 0 : index
    %c0_0 = arith.constant 0 : index
    %c0_1 = arith.constant 0 : index
    %c0_2 = arith.constant 0 : index
    %0 = vector.load %arg3[%c0, %c0_0, %c0_1, %c0_2] : memref<1x1x20x128xf32, #tpu.memory_space<vmem>>, vector<1x1x20x128xf32>
    %1 = vector.shape_cast %0 : vector<1x1x20x128xf32> to vector<20x128xf32>
    %c0_3 = arith.constant 0 : index
    %c0_4 = arith.constant 0 : index
    %c0_5 = arith.constant 0 : index
    %c0_6 = arith.constant 0 : index
    %2 = vector.load %arg4[%c0_3, %c0_4, %c0_5, %c0_6] : memref<1x1x20x128xf32, #tpu.memory_space<vmem>>, vector<1x1x20x128xf32>
    %3 = vector.shape_cast %2 : vector<1x1x20x128xf32> to vector<20x128xf32>
    %4 = vector.shape_cast %1 : vector<20x128xf32> to vector<1x1x20x128xf32>
    tpu.vector_store %arg4[%c0_3, %c0_4, %c0_5, %c0_6], %4 {strides = array<i32>} : memref<1x1x20x128xf32, #tpu.memory_space<vmem>>, vector<1x1x20x128xf32>,
    return
  }
  func.func @transform_0(%arg0: i32, %arg1: i32, %arg2: memref<2x16xi32, #tpu.memory_space<smem>>) -> (i32, i32, i32, i32) {
    %0 = arith.index_cast %arg0 : i32 to index
    %1 = arith.index_cast %arg1 : i32 to index
    %2 = memref.load %arg2[%0, %1] : memref<2x16xi32, #tpu.memory_space<smem>>
    %c0_i32 = arith.constant 0 : i32
    %c0_i32_0 = arith.constant 0 : i32
    %c0_i32_1 = arith.constant 0 : i32
    return %arg0, %2, %c0_i32, %c0_i32_0 : i32, i32, i32, i32
  }
  func.func @transform_1(%arg0: i32, %arg1: i32, %arg2: memref<2x16xi32, #tpu.memory_space<smem>>) -> (i32, i32, i32, i32) {
    %c0_i32 = arith.constant 0 : i32
    %c0_i32_0 = arith.constant 0 : i32
    %c0_i32_1 = arith.constant 0 : i32
    return %arg0, %arg1, %c0_i32, %c0_i32_0 : i32, i32, i32, i32
  }
}

</mosaic_0001>

<bundles_post_ra>
// kernel: _forward.1
= control target key start
LH: loop header
LB: loop body
LE: loop exit
PB: predicated region body
PF: predicated region fallthrough
CT: control target
= control target key end

     0   :  { %s498_s0 = inlined_call_operand.vmem [shape: s32[2,16], index: 0, kind: input, shape index: {}]   ;;  %s499_s1 = inlined_call_operand.vmem [shape: f32[2,16,20,128], index: 1, kind: input, shape index: {}]   ;;  %s500_s2 = inlined_call_operand.vmem [shape: f32[2,8,20,128], index: 2, kind: output, shape index: {}]  }
   0x1   :  { %s7_s11 = sshll.u32 %s498_s0, 4  ;;  %s8_s11 = int_to_ptr.vmem [resolvable:$true] %s7_s11 }
   0x2   :  { %s374_s12 = scalar_lea.vmem %s8_s11, 32  ;;  %p379_p1 = scmp.lt.s32.totalorder %s8_s11, %s8_s11 }
   0x3   :  { %p375_p0 = scmp.ne.s32.totalorder %s8_s11, %s374_s12  ;;  %p380_p2 = scmp.lt.s32.totalorder %s374_s12, %s374_s12 }
   0x5   :  { %p381_p3 = por %p380_p2, %p379_p1 }
   0x7   :  { %p382_p4 = pnand %p381_p3, %p375_p0 }
   0x9   :  { %385 = shalt.err (!%p382_p4)  }
   0xa   :  { %s428_s13 = smov [#allocation3]  }
   0xb   :  { %10 = dma.vmem_to_smem %s8_s11, 32, %s428_s13, [#allocation2] }
   0xc   :  { %406 = dma.done.wait [#allocation2], 32 }
   0xd   :  { %407 = vsyncadd [#allocation2], 4294967264 }
   0xe   :  { %12 = sfence }
   0xf   :  { %s447_s14 = smov 0   ;;  %s449_s15 = smov 0  }
  0x10   :  { %s451_s16 = smov 0   ;;  %s453_s0 = smov 0  }
  0x11   :  { %s455_s17 = smov 0  }
  0x12 LB: > { %s27_s18 = sadd.s32 1, %s418_s16  ;;  %s30_s19 = sadd.s32 1, %s422_s0  ;;  %s426_s17 = sphi %s455_s17, %s18_s17   ;;  %s422_s0 = sphi %s453_s0, %s504_s0   ;;  %s418_s16 = sphi %s451_s16, %s503_s16   ;;  %s414_s15 = sphi %s449_s15, %s502_s15   ;;  %s410_s14 = sphi %s447_s14, %s501_s14  }
  0x13   : > { %p28_p5 = scmp.ge.s32.totalorder %s27_s18, 8  ;;  %p323_p6 = scmp.ge.s32.totalorder %s426_s17, 1 }
  0x14   : > { %p146_p7 = scmp.lt.s32.totalorder %s426_s17, 17 }
  0x15   : > { %s506_s18 = smov (%p28_p5, %s27_s18), 0  ;;  %s508_s19 = smov (!%p28_p5, %s30_s19), %s422_s0 }
  0x16   : > { %p147_p8 = pnand %p323_p6, %p146_p7  ;;  %p32_p9 = scmp.ge.s32.totalorder %s508_s19, 2 }
  0x17   : > { %s182_s20 = sshra.s32 (!%p147_p8), %s410_s14, 7  ;;  %s187_s21 = sand.u32 (!%p147_p8), 127, %s410_s14 }
  0x18   : > { %s510_s19 = smov (%p32_p9, %s508_s19), 0  ;;  %150 = sbr.rel (%p147_p8) target bundleno = 45 (0x2d), region = 24 }
  0x19   : > { %s184_s22 = sadd.s32 (!%p147_p8), %s414_s15, %s182_s20  ;;  %p190_p10 = scmp.lt.s32.totalorder (!%p147_p8), %s414_s15, 1 }
  0x1a   : > { %s324_s23 = sshll.u32 (!%p147_p8), %s184_s22, 7  ;;  %p209_p11 = scmp.lt.s32.totalorder (!%p147_p8), %s410_s14, 7 }
  0x1b   : > { %s188_s24 = sadd.s32 (!%p147_p8), %s324_s23, %s187_s21 }
  0x1c   : > { %s189_s25 = sld [smem:[#allocation3 + %s188_s24]] (!%p147_p8) }
  0x1f   : > { %s512_s15 = smov (!%p190_p10, %s414_s15), 1  ;;  %s514_s14 = smov (!%p209_p11, %s410_s14), 7 }
  0x20   : > { %s331_s26 = smul.u32 3, %s514_s14 }
  0x21   : > { %s332_s27 = smul.u32 24, %s512_s15 }
  0x22   : > { %p192_p12 = scmp.lt.s32.totalorder %s189_s25, 15  ;;  %s330_s28 = smul.u32 48, %s512_s15 }
  0x23   : > { %s213_s29 = sadd.s32 %s332_s27, %s331_s26 }
  0x24   : > { %s516_s25 = smov (!%p192_p12, %s189_s25), 15  ;;  %s326_s3 = sshll.u32 %s213_s29, 3 }
  0x25   : > { %s329_s30 = smul.u32 3, %s516_s25  ;;  %s215_s8 = scalar_lea.vmem %s500_s2, %s326_s3 }
  0x27   : > { %s196_s4 = sadd.s32 %s330_s28, %s329_s30 }
  0x28   : > { %s325_s5 = sshll.u32 %s196_s4, 3 }
  0x29   : > { %s198_s11 = scalar_lea.vmem %s499_s1, %s325_s5 }
  0x2a   : > { %v216_v0 = vld [vmem:[%s198_s11] sm:$0xff]  ;;  %v217_v1 = vld [vmem:[%s198_s11 + $0x8] sm:$0xff]  ;;  %v218_v2 = vld [vmem:[%s198_s11 + $0x10] sm:$0xf] }
  0x2b   : > { %219 = vst [vmem:[%s215_s8] sm:$0xff] %v216_v0  ;;  %220 = vst [vmem:[%s215_s8 + $0x8] sm:$0xff] %v217_v1 }
  0x2c   : > { %221 = vst [vmem:[%s215_s8 + $0x10] sm:$0xf] %v218_v2 }
  0x2d PF: > { %s18_s17 = sadd.s32 1, %s426_s17   ;;  %s501_s14 = smov %s418_s16 }
  0x2e   : > { %p15_p13 = scmp.ge.s32.totalorder %s18_s17, 18   ;;  %s502_s15 = smov %s422_s0 }
  0x2f   : > { %s503_s16 = smov %s506_s18  ;;  %s504_s0 = smov %s510_s19 }
  0x30   :  { %17 = sbr.rel (!%p15_p13) target bundleno = 18 (0x12), region = 54 }

</bundles_post_ra>
